<compile_context>
chip_gen: v6e
topology: v6e:2x2x1
jax: 0.10.0
libtpu: 0.0.40
codegen_flags: <defaults>
</compile_context>

<pallas_src>
import functools

import jax
import jax.numpy as jnp
from jax.experimental import pallas as pl
from jax.experimental.pallas import tpu as pltpu


def _round_up(x, m):
    return (x + m - 1) // m * m


def _pad_to(a, shape, dtype):
    a = a.astype(dtype)
    pads = [(0, s - d) for d, s in zip(a.shape, shape)]
    return jnp.pad(a, pads)


def _vae_decoder2_kernel(
    z1_ref, z2_ref, eps_ref,
    w1_ref, b1_ref,      # FC_dec1  : latent2 -> hidden2
    w2_ref, b2_ref,      # FC_dec2  : hidden2 -> hidden2
    wmv_ref, bmv_ref,    # fused FC_mean1|FC_var1 : hidden2 -> 2*latent1
    w3_ref, b3_ref,      # FC_dec3  : latent1 -> hidden1
    w4_ref, b4_ref,      # FC_dec4  : hidden1 -> hidden1
    wo_ref, bo_ref,      # FC_output: hidden1 -> output_dim
    theta_ref, zd_ref, mean_ref, logvar_ref,
    *, latent1_pad,
):
    f32 = jnp.float32

    def dense(x, w_ref, b_ref):
        # Weights arrive as bf16 (DMA saving); upcast is exact, accumulate f32.
        w = w_ref[...].astype(f32)
        return jnp.dot(x, w, preferred_element_type=f32) + b_ref[...]

    # ---- branch from z2: two tanh layers, then fused mean/log_var head ----
    h1 = jnp.tanh(dense(z2_ref[...], w1_ref, b1_ref))
    h2 = jnp.tanh(dense(h1, w2_ref, b2_ref))
    mv = dense(h2, wmv_ref, bmv_ref)                 # [tb, 2*latent1_pad]
    mean1 = mv[:, :latent1_pad]                      # static, 128-aligned split
    logvar1 = mv[:, latent1_pad:]

    # reparameterization: z = mean + exp(0.5 * log_var) * eps
    zd = mean1 + jnp.exp(0.5 * logvar1) * eps_ref[...]

    # ---- branch from z1: two tanh layers, sigmoid output head ----
    h3 = jnp.tanh(dense(z1_ref[...], w3_ref, b3_ref))
    h4 = jnp.tanh(dense(h3, w4_ref, b4_ref))
    theta = jax.nn.sigmoid(dense(h4, wo_ref, bo_ref))

    theta_ref[...] = theta
    zd_ref[...] = zd
    mean_ref[...] = mean1
    logvar_ref[...] = logvar1


@jax.jit
def vae_decoder2_forward(z1, z2, eps, params):
    """params: dict of (W:[in,out], b:[out]) per layer."""
    f32 = jnp.float32
    wdt = jnp.bfloat16

    B = z1.shape[0]
    latent2, hidden2 = params["w1"].shape
    latent1 = params["wm"].shape[1]
    hidden1 = params["w3"].shape[1]
    out_dim = params["wo"].shape[1]

    # Lane-aligned padded dims.
    L1P = _round_up(latent1, 128)
    L2P = _round_up(latent2, 128)
    H1P = _round_up(hidden1, 128)
    H2P = _round_up(hidden2, 128)
    OUTP = _round_up(out_dim, 128)

    # Batch tiling: big batches split into 128-row tiles (parallel grid axis
    # -> both v7x TCs); small batches pad to a multiple of 8, grid of 1.
    tile_b = 128 if B >= 128 else _round_up(B, 8)
    B_pad = _round_up(B, tile_b)
    grid = (B_pad // tile_b,)

    # ---- pad + cast parameters (zero padding keeps the math exact) ----
    w1 = _pad_to(params["w1"], (L2P, H2P), wdt)
    b1 = _pad_to(params["b1"].reshape(1, -1), (1, H2P), f32)
    w2 = _pad_to(params["w2"], (H2P, H2P), wdt)
    b2 = _pad_to(params["b2"].reshape(1, -1), (1, H2P), f32)
    # Fused mean|var head: each half padded to L1P columns so the in-kernel
    # split is at a static multiple of 128.
    wmv = jnp.concatenate(
        [_pad_to(params["wm"], (H2P, L1P), wdt),
         _pad_to(params["wv"], (H2P, L1P), wdt)], axis=1)
    bmv = jnp.concatenate(
        [_pad_to(params["bm"].reshape(1, -1), (1, L1P), f32),
         _pad_to(params["bv"].reshape(1, -1), (1, L1P), f32)], axis=1)
    w3 = _pad_to(params["w3"], (L1P, H1P), wdt)
    b3 = _pad_to(params["b3"].reshape(1, -1), (1, H1P), f32)
    w4 = _pad_to(params["w4"], (H1P, H1P), wdt)
    b4 = _pad_to(params["b4"].reshape(1, -1), (1, H1P), f32)
    wo = _pad_to(params["wo"], (H1P, OUTP), wdt)
    bo = _pad_to(params["bo"].reshape(1, -1), (1, OUTP), f32)

    z1p = _pad_to(z1, (B_pad, L1P), f32)
    z2p = _pad_to(z2, (B_pad, L2P), f32)
    epsp = _pad_to(eps, (B_pad, L1P), f32)

    in_arrays = (z1p, z2p, epsp,
                 w1, b1, w2, b2, wmv, bmv, w3, b3, w4, b4, wo, bo)

    def batch_spec(n):
        return pl.BlockSpec((tile_b, n), lambda i: (i, 0))

    def full_spec(arr):
        # Constant index map -> block stays VMEM-resident across grid steps.
        return pl.BlockSpec(arr.shape, lambda i: (0, 0))

    in_specs = [batch_spec(L1P), batch_spec(L2P), batch_spec(L1P)]
    in_specs += [full_spec(a) for a in in_arrays[3:]]

    out_shapes = (
        jax.ShapeDtypeStruct((B_pad, OUTP), f32),   # theta
        jax.ShapeDtypeStruct((B_pad, L1P), f32),    # zd
        jax.ShapeDtypeStruct((B_pad, L1P), f32),    # mean1
        jax.ShapeDtypeStruct((B_pad, L1P), f32),    # log_var1
    )
    out_specs = (batch_spec(OUTP), batch_spec(L1P),
                 batch_spec(L1P), batch_spec(L1P))

    # Advisory cost estimate so XLA can overlap this call with its neighbors.
    flops = 2 * B_pad * (L2P * H2P + H2P * H2P + H2P * 2 * L1P
                         + L1P * H1P + H1P * H1P + H1P * OUTP)
    transcendentals = B_pad * (2 * H2P + L1P + 2 * H1P + OUTP)
    out_bytes = 4 * B_pad * (OUTP + 3 * L1P)
    bytes_accessed = int(sum(int(a.size) * a.dtype.itemsize for a in in_arrays)
                         + out_bytes)

    kernel = functools.partial(_vae_decoder2_kernel, latent1_pad=L1P)

    theta_p, zd_p, mean_p, logvar_p = pl.pallas_call(
        kernel,
        out_shape=out_shapes,
        grid_spec=pltpu.PrefetchScalarGridSpec(
            num_scalar_prefetch=0,
            grid=grid,
            in_specs=in_specs,
            out_specs=out_specs,
        ),
        compiler_params=pltpu.CompilerParams(
            dimension_semantics=("parallel",)),
        cost_estimate=pl.CostEstimate(
            flops=flops,
            transcendentals=transcendentals,
            bytes_accessed=bytes_accessed),
    )(*in_arrays)

    # Slice padded rows/columns back off.
    return (theta_p[:B, :out_dim],
            zd_p[:B, :latent1],
            mean_p[:B, :latent1],
            logvar_p[:B, :latent1])


def init_params(key, output_dim, hidden_dim_1=200, latent_dim_1=100,
                hidden_dim_2=100, latent_dim_2=50):
    """Deterministic synthetic init. Weights stored as [in, out]."""
    layer_dims = {
        "1": (latent_dim_2, hidden_dim_2),   # FC_dec1
        "2": (hidden_dim_2, hidden_dim_2),   # FC_dec2
        "m": (hidden_dim_2, latent_dim_1),   # FC_mean1
        "v": (hidden_dim_2, latent_dim_1),   # FC_var1
        "3": (latent_dim_1, hidden_dim_1),   # FC_dec3
        "4": (hidden_dim_1, hidden_dim_1),   # FC_dec4
        "o": (hidden_dim_1, output_dim),     # FC_output
    }
    params = {}
    for name, (din, dout) in layer_dims.items():
        key, kw, kb = jax.random.split(key, 3)
        bound = 1.0 / jnp.sqrt(din)  # PyTorch Linear default init range
        params[f"w{name}"] = jax.random.uniform(
            kw, (din, dout), jnp.float32, minval=-bound, maxval=bound)
        params[f"b{name}"] = jax.random.uniform(
            kb, (dout,), jnp.float32, minval=-bound, maxval=bound)
    return params


def reference_forward(z1, z2, eps, params, weight_dtype=jnp.float32):
    """Pure-JAX reference mirroring the PyTorch module.

    weight_dtype=bfloat16 reproduces the kernel's weight quantization exactly
    (bf16 -> f32 upcast is lossless), so the comparison isolates kernel math.
    """
    def lin(x, w, b):
        W = params[w].astype(weight_dtype).astype(jnp.float32)
        return x @ W + params[b]

    h1 = jnp.tanh(lin(z2, "w1", "b1"))
    h2 = jnp.tanh(lin(h1, "w2", "b2"))
    mean1 = lin(h2, "wm", "bm")
    logvar1 = lin(h2, "wv", "bv")
    zd = mean1 + jnp.exp(0.5 * logvar1) * eps
    h3 = jnp.tanh(lin(z1, "w3", "b3"))
    h4 = jnp.tanh(lin(h3, "w4", "b4"))
    theta = jax.nn.sigmoid(lin(h4, "wo", "bo"))
    return theta, zd, mean1, logvar1


if __name__ == "__main__":
    # Small shapes consistent with the module's constructor defaults.
    batch = 8
    output_dim = 64
    hidden_dim_1, latent_dim_1 = 200, 100
    hidden_dim_2, latent_dim_2 = 100, 50

    key = jax.random.PRNGKey(0)
    key, kp, kz1, kz2, keps = jax.random.split(key, 5)

    params = init_params(kp, output_dim, hidden_dim_1, latent_dim_1,
                         hidden_dim_2, latent_dim_2)

    z1 = jax.random.normal(kz1, (batch, latent_dim_1), jnp.float32)
    z2 = jax.random.normal(kz2, (batch, latent_dim_2), jnp.float32)
    # TODO(synk): torch.randn_like eps is generated inside the torch forward;
    # here it is drawn host-side and passed in so results are reproducible.
    eps = jax.random.normal(keps, (batch, latent_dim_1), jnp.float32)

    outs = jax.block_until_ready(vae_decoder2_forward(z1, z2, eps, params))

    # Cross-check against a pure-JAX reference with identically quantized
    # (bf16) weights; remaining diffs are only f32 reduction-order noise.
    ref = reference_forward(z1, z2, eps, params, weight_dtype=jnp.bfloat16)
    for got, want in zip(outs, ref):
        assert got.shape == want.shape
        assert jnp.max(jnp.abs(got - want)) < 1e-3

    print("KERNEL_OK")
</pallas_src>

<mosaic_0001>
module attributes {stable_mosaic.version = 11 : i64} {
  func.func @_vae_decoder2_kernel(%arg0: i32, %arg1: memref<8x128xf32, #tpu.memory_space<vmem>>, %arg2: memref<8x128xf32, #tpu.memory_space<vmem>>, %arg3: memref<8x128xf32, #tpu.memory_space<vmem>>, %arg4: memref<128x128xbf16, #tpu.memory_space<vmem>>, %arg5: memref<1x128xf32, #tpu.memory_space<vmem>>, %arg6: memref<128x128xbf16, #tpu.memory_space<vmem>>, %arg7: memref<1x128xf32, #tpu.memory_space<vmem>>, %arg8: memref<128x256xbf16, #tpu.memory_space<vmem>>, %arg9: memref<1x256xf32, #tpu.memory_space<vmem>>, %arg10: memref<128x256xbf16, #tpu.memory_space<vmem>>, %arg11: memref<1x256xf32, #tpu.memory_space<vmem>>, %arg12: memref<256x256xbf16, #tpu.memory_space<vmem>>, %arg13: memref<1x256xf32, #tpu.memory_space<vmem>>, %arg14: memref<256x128xbf16, #tpu.memory_space<vmem>>, %arg15: memref<1x128xf32, #tpu.memory_space<vmem>>, %arg16: memref<8x128xf32, #tpu.memory_space<vmem>>, %arg17: memref<8x128xf32, #tpu.memory_space<vmem>>, %arg18: memref<8x128xf32, #tpu.memory_space<vmem>>, %arg19: memref<8x128xf32, #tpu.memory_space<vmem>>) attributes {dimension_semantics = [#tpu.dimension_semantics<parallel>], iteration_bounds = array<i64: 1>, scalar_prefetch = 0 : i64, scratch_operands = 0 : i64, tpu.core_type = #tpu.core_type<tc>, window_params = [{transform_indices = @transform_0, window_bounds = array<i64: 8, 128>}, {transform_indices = @transform_1, window_bounds = array<i64: 8, 128>}, {transform_indices = @transform_2, window_bounds = array<i64: 8, 128>}, {pipeline_mode = #tpu.pipeline_mode<synchronous>, transform_indices = @transform_3, window_bounds = array<i64: 128, 128>}, {pipeline_mode = #tpu.pipeline_mode<synchronous>, transform_indices = @transform_4, window_bounds = array<i64: 1, 128>}, {pipeline_mode = #tpu.pipeline_mode<synchronous>, transform_indices = @transform_5, window_bounds = array<i64: 128, 128>}, {pipeline_mode = #tpu.pipeline_mode<synchronous>, transform_indices = @transform_6, window_bounds = array<i64: 1, 128>}, {pipeline_mode = #tpu.pipeline_mode<synchronous>, transform_indices = @transform_7, window_bounds = array<i64: 128, 256>}, {pipeline_mode = #tpu.pipeline_mode<synchronous>, transform_indices = @transform_8, window_bounds = array<i64: 1, 256>}, {pipeline_mode = #tpu.pipeline_mode<synchronous>, transform_indices = @transform_9, window_bounds = array<i64: 128, 256>}, {pipeline_mode = #tpu.pipeline_mode<synchronous>, transform_indices = @transform_10, window_bounds = array<i64: 1, 256>}, {pipeline_mode = #tpu.pipeline_mode<synchronous>, transform_indices = @transform_11, window_bounds = array<i64: 256, 256>}, {pipeline_mode = #tpu.pipeline_mode<synchronous>, transform_indices = @transform_12, window_bounds = array<i64: 1, 256>}, {pipeline_mode = #tpu.pipeline_mode<synchronous>, transform_indices = @transform_13, window_bounds = array<i64: 256, 128>}, {pipeline_mode = #tpu.pipeline_mode<synchronous>, transform_indices = @transform_14, window_bounds = array<i64: 1, 128>}, {transform_indices = @transform_15, window_bounds = array<i64: 8, 128>}, {transform_indices = @transform_16, window_bounds = array<i64: 8, 128>}, {transform_indices = @transform_17, window_bounds = array<i64: 8, 128>}, {transform_indices = @transform_18, window_bounds = array<i64: 8, 128>}]} {
    %c0 = arith.constant 0 : index
    %c0_0 = arith.constant 0 : index
    %0 = vector.load %arg2[%c0, %c0_0] : memref<8x128xf32, #tpu.memory_space<vmem>>, vector<8x128xf32>
    %c0_1 = arith.constant 0 : index
    %c0_2 = arith.constant 0 : index
    %1 = vector.load %arg4[%c0_1, %c0_2] : memref<128x128xbf16, #tpu.memory_space<vmem>>, vector<128x128xbf16>
    %2 = arith.extf %1 : vector<128x128xbf16> to vector<128x128xf32>
    %cst = arith.constant dense<0.000000e+00> : vector<8x128xf32>
    %3 = tpu.matmul %0, %2, %cst {dimension_numbers = #tpu.dot_dimension_numbers<[1], [0], [0], [1], [0, 0, 1, 1], [], []>} : vector<8x128xf32>, vector<128x128xf32>, vector<8x128xf32> -> vector<8x128xf32>
    %c0_3 = arith.constant 0 : index
    %c0_4 = arith.constant 0 : index
    %4 = vector.load %arg5[%c0_3, %c0_4] : memref<1x128xf32, #tpu.memory_space<vmem>>, vector<1x128xf32>
    %5 = vector.broadcast %4 : vector<1x128xf32> to vector<8x128xf32>
    %6 = arith.addf %3, %5 : vector<8x128xf32>
    %7 = math.tanh %6 : vector<8x128xf32>
    %c0_5 = arith.constant 0 : index
    %c0_6 = arith.constant 0 : index
    %8 = vector.load %arg6[%c0_5, %c0_6] : memref<128x128xbf16, #tpu.memory_space<vmem>>, vector<128x128xbf16>
    %9 = arith.extf %8 : vector<128x128xbf16> to vector<128x128xf32>
    %cst_7 = arith.constant dense<0.000000e+00> : vector<8x128xf32>
    %10 = tpu.matmul %7, %9, %cst_7 {dimension_numbers = #tpu.dot_dimension_numbers<[1], [0], [0], [1], [0, 0, 1, 1], [], []>} : vector<8x128xf32>, vector<128x128xf32>, vector<8x128xf32> -> vector<8x128xf32>
    %c0_8 = arith.constant 0 : index
    %c0_9 = arith.constant 0 : index
    %11 = vector.load %arg7[%c0_8, %c0_9] : memref<1x128xf32, #tpu.memory_space<vmem>>, vector<1x128xf32>
    %12 = vector.broadcast %11 : vector<1x128xf32> to vector<8x128xf32>
    %13 = arith.addf %10, %12 : vector<8x128xf32>
    %14 = math.tanh %13 : vector<8x128xf32>
    %c0_10 = arith.constant 0 : index
    %c0_11 = arith.constant 0 : index
    %15 = vector.load %arg8[%c0_10, %c0_11] : memref<128x256xbf16, #tpu.memory_space<vmem>>, vector<128x256xbf16>
    %16 = arith.extf %15 : vector<128x256xbf16> to vector<128x256xf32>
    %cst_12 = arith.constant dense<0.000000e+00> : vector<8x256xf32>
    %17 = tpu.matmul %14, %16, %cst_12 {dimension_numbers = #tpu.dot_dimension_numbers<[1], [0], [0], [1], [0, 0, 1, 1], [], []>} : vector<8x128xf32>, vector<128x256xf32>, vector<8x256xf32> -> vector<8x256xf32>
    %c0_13 = arith.constant 0 : index
    %c0_14 = arith.constant 0 : index
    %18 = vector.load %arg9[%c0_13, %c0_14] : memref<1x256xf32, #tpu.memory_space<vmem>>, vector<1x256xf32>
    %19 = vector.broadcast %18 : vector<1x256xf32> to vector<8x256xf32>
    %20 = arith.addf %17, %19 : vector<8x256xf32>
    %21 = vector.extract_strided_slice %20 {offsets = [0, 0], sizes = [8, 128], strides = [1, 1]} : vector<8x256xf32> to vector<8x128xf32>
    %22 = vector.extract_strided_slice %20 {offsets = [0, 128], sizes = [8, 128], strides = [1, 1]} : vector<8x256xf32> to vector<8x128xf32>
    %cst_15 = arith.constant 5.000000e-01 : f32
    %23 = vector.broadcast %cst_15 : f32 to vector<8x128xf32>
    %24 = arith.mulf %23, %22 : vector<8x128xf32>
    %25 = math.exp %24 : vector<8x128xf32>
    %c0_16 = arith.constant 0 : index
    %c0_17 = arith.constant 0 : index
    %26 = vector.load %arg3[%c0_16, %c0_17] : memref<8x128xf32, #tpu.memory_space<vmem>>, vector<8x128xf32>
    %27 = arith.mulf %25, %26 : vector<8x128xf32>
    %28 = arith.addf %21, %27 : vector<8x128xf32>
    %c0_18 = arith.constant 0 : index
    %c0_19 = arith.constant 0 : index
    %29 = vector.load %arg1[%c0_18, %c0_19] : memref<8x128xf32, #tpu.memory_space<vmem>>, vector<8x128xf32>
    %c0_20 = arith.constant 0 : index
    %c0_21 = arith.constant 0 : index
    %30 = vector.load %arg10[%c0_20, %c0_21] : memref<128x256xbf16, #tpu.memory_space<vmem>>, vector<128x256xbf16>
    %31 = arith.extf %30 : vector<128x256xbf16> to vector<128x256xf32>
    %cst_22 = arith.constant dense<0.000000e+00> : vector<8x256xf32>
    %32 = tpu.matmul %29, %31, %cst_22 {dimension_numbers = #tpu.dot_dimension_numbers<[1], [0], [0], [1], [0, 0, 1, 1], [], []>} : vector<8x128xf32>, vector<128x256xf32>, vector<8x256xf32> -> vector<8x256xf32>
    %c0_23 = arith.constant 0 : index
    %c0_24 = arith.constant 0 : index
    %33 = vector.load %arg11[%c0_23, %c0_24] : memref<1x256xf32, #tpu.memory_space<vmem>>, vector<1x256xf32>
    %34 = vector.broadcast %33 : vector<1x256xf32> to vector<8x256xf32>
    %35 = arith.addf %32, %34 : vector<8x256xf32>
    %36 = math.tanh %35 : vector<8x256xf32>
    %c0_25 = arith.constant 0 : index
    %c0_26 = arith.constant 0 : index
    %37 = vector.load %arg12[%c0_25, %c0_26] : memref<256x256xbf16, #tpu.memory_space<vmem>>, vector<256x256xbf16>
    %38 = arith.extf %37 : vector<256x256xbf16> to vector<256x256xf32>
    %cst_27 = arith.constant dense<0.000000e+00> : vector<8x256xf32>
    %39 = tpu.matmul %36, %38, %cst_27 {dimension_numbers = #tpu.dot_dimension_numbers<[1], [0], [0], [1], [0, 0, 1, 1], [], []>} : vector<8x256xf32>, vector<256x256xf32>, vector<8x256xf32> -> vector<8x256xf32>
    %c0_28 = arith.constant 0 : index
    %c0_29 = arith.constant 0 : index
    %40 = vector.load %arg13[%c0_28, %c0_29] : memref<1x256xf32, #tpu.memory_space<vmem>>, vector<1x256xf32>
    %41 = vector.broadcast %40 : vector<1x256xf32> to vector<8x256xf32>
    %42 = arith.addf %39, %41 : vector<8x256xf32>
    %43 = math.tanh %42 : vector<8x256xf32>
    %c0_30 = arith.constant 0 : index
    %c0_31 = arith.constant 0 : index
    %44 = vector.load %arg14[%c0_30, %c0_31] : memref<256x128xbf16, #tpu.memory_space<vmem>>, vector<256x128xbf16>
    %45 = arith.extf %44 : vector<256x128xbf16> to vector<256x128xf32>
    %cst_32 = arith.constant dense<0.000000e+00> : vector<8x128xf32>
    %46 = tpu.matmul %43, %45, %cst_32 {dimension_numbers = #tpu.dot_dimension_numbers<[1], [0], [0], [1], [0, 0, 1, 1], [], []>} : vector<8x256xf32>, vector<256x128xf32>, vector<8x128xf32> -> vector<8x128xf32>
    %c0_33 = arith.constant 0 : index
    %c0_34 = arith.constant 0 : index
    %47 = vector.load %arg15[%c0_33, %c0_34] : memref<1x128xf32, #tpu.memory_space<vmem>>, vector<1x128xf32>
    %48 = vector.broadcast %47 : vector<1x128xf32> to vector<8x128xf32>
    %49 = arith.addf %46, %48 : vector<8x128xf32>
    %50 = arith.negf %49 : vector<8x128xf32>
    %51 = math.exp %50 : vector<8x128xf32>
    %cst_35 = arith.constant 1.000000e+00 : f32
    %52 = vector.broadcast %cst_35 : f32 to vector<8x128xf32>
    %53 = arith.addf %52, %51 : vector<8x128xf32>
    %54 = arith.divf %52, %53 : vector<8x128xf32>
    %c0_36 = arith.constant 0 : index
    %c0_37 = arith.constant 0 : index
    %55 = vector.load %arg16[%c0_36, %c0_37] : memref<8x128xf32, #tpu.memory_space<vmem>>, vector<8x128xf32>
    tpu.vector_store %arg16[%c0_36, %c0_37], %54 {strides = array<i32>} : memref<8x128xf32, #tpu.memory_space<vmem>>, vector<8x128xf32>,
    %c0_38 = arith.constant 0 : index
    %c0_39 = arith.constant 0 : index
    %56 = vector.load %arg17[%c0_38, %c0_39] : memref<8x128xf32, #tpu.memory_space<vmem>>, vector<8x128xf32>
    tpu.vector_store %arg17[%c0_38, %c0_39], %28 {strides = array<i32>} : memref<8x128xf32, #tpu.memory_space<vmem>>, vector<8x128xf32>,
    %c0_40 = arith.constant 0 : index
    %c0_41 = arith.constant 0 : index
    %57 = vector.load %arg18[%c0_40, %c0_41] : memref<8x128xf32, #tpu.memory_space<vmem>>, vector<8x128xf32>
    tpu.vector_store %arg18[%c0_40, %c0_41], %21 {strides = array<i32>} : memref<8x128xf32, #tpu.memory_space<vmem>>, vector<8x128xf32>,
    %c0_42 = arith.constant 0 : index
    %c0_43 = arith.constant 0 : index
    %58 = vector.load %arg19[%c0_42, %c0_43] : memref<8x128xf32, #tpu.memory_space<vmem>>, vector<8x128xf32>
    tpu.vector_store %arg19[%c0_42, %c0_43], %22 {strides = array<i32>} : memref<8x128xf32, #tpu.memory_space<vmem>>, vector<8x128xf32>,
    return
  }
  func.func @transform_0(%arg0: i32) -> (i32, i32) {
    %c0_i32 = arith.constant 0 : i32
    %c0_i32_0 = arith.constant 0 : i32
    return %arg0, %c0_i32 : i32, i32
  }
  func.func @transform_1(%arg0: i32) -> (i32, i32) {
    %c0_i32 = arith.constant 0 : i32
    %c0_i32_0 = arith.constant 0 : i32
    return %arg0, %c0_i32 : i32, i32
  }
  func.func @transform_2(%arg0: i32) -> (i32, i32) {
    %c0_i32 = arith.constant 0 : i32
    %c0_i32_0 = arith.constant 0 : i32
    return %arg0, %c0_i32 : i32, i32
  }
  func.func @transform_3(%arg0: i32) -> (i32, i32) {
    %c0_i32 = arith.constant 0 : i32
    %c0_i32_0 = arith.constant 0 : i32
    %c0_i32_1 = arith.constant 0 : i32
    return %c0_i32, %c0_i32_0 : i32, i32
  }
  func.func @transform_4(%arg0: i32) -> (i32, i32) {
    %c0_i32 = arith.constant 0 : i32
    %c0_i32_0 = arith.constant 0 : i32
    %c0_i32_1 = arith.constant 0 : i32
    return %c0_i32, %c0_i32_0 : i32, i32
  }
  func.func @transform_5(%arg0: i32) -> (i32, i32) {
    %c0_i32 = arith.constant 0 : i32
    %c0_i32_0 = arith.constant 0 : i32
    %c0_i32_1 = arith.constant 0 : i32
    return %c0_i32, %c0_i32_0 : i32, i32
  }
  func.func @transform_6(%arg0: i32) -> (i32, i32) {
    %c0_i32 = arith.constant 0 : i32
    %c0_i32_0 = arith.constant 0 : i32
    %c0_i32_1 = arith.constant 0 : i32
    return %c0_i32, %c0_i32_0 : i32, i32
  }
  func.func @transform_7(%arg0: i32) -> (i32, i32) {
    %c0_i32 = arith.constant 0 : i32
    %c0_i32_0 = arith.constant 0 : i32
    %c0_i32_1 = arith.constant 0 : i32
    return %c0_i32, %c0_i32_0 : i32, i32
  }
  func.func @transform_8(%arg0: i32) -> (i32, i32) {
    %c0_i32 = arith.constant 0 : i32
    %c0_i32_0 = arith.constant 0 : i32
    %c0_i32_1 = arith.constant 0 : i32
    return %c0_i32, %c0_i32_0 : i32, i32
  }
  func.func @transform_9(%arg0: i32) -> (i32, i32) {
    %c0_i32 = arith.constant 0 : i32
    %c0_i32_0 = arith.constant 0 : i32
    %c0_i32_1 = arith.constant 0 : i32
    return %c0_i32, %c0_i32_0 : i32, i32
  }
  func.func @transform_10(%arg0: i32) -> (i32, i32) {
    %c0_i32 = arith.constant 0 : i32
    %c0_i32_0 = arith.constant 0 : i32
    %c0_i32_1 = arith.constant 0 : i32
    return %c0_i32, %c0_i32_0 : i32, i32
  }
  func.func @transform_11(%arg0: i32) -> (i32, i32) {
    %c0_i32 = arith.constant 0 : i32
    %c0_i32_0 = arith.constant 0 : i32
    %c0_i32_1 = arith.constant 0 : i32
    return %c0_i32, %c0_i32_0 : i32, i32
  }
  func.func @transform_12(%arg0: i32) -> (i32, i32) {
    %c0_i32 = arith.constant 0 : i32
    %c0_i32_0 = arith.constant 0 : i32
    %c0_i32_1 = arith.constant 0 : i32
    return %c0_i32, %c0_i32_0 : i32, i32
  }
  func.func @transform_13(%arg0: i32) -> (i32, i32) {
    %c0_i32 = arith.constant 0 : i32
    %c0_i32_0 = arith.constant 0 : i32
    %c0_i32_1 = arith.constant 0 : i32
    return %c0_i32, %c0_i32_0 : i32, i32
  }
  func.func @transform_14(%arg0: i32) -> (i32, i32) {
    %c0_i32 = arith.constant 0 : i32
    %c0_i32_0 = arith.constant 0 : i32
    %c0_i32_1 = arith.constant 0 : i32
    return %c0_i32, %c0_i32_0 : i32, i32
  }
  func.func @transform_15(%arg0: i32) -> (i32, i32) {
    %c0_i32 = arith.constant 0 : i32
    %c0_i32_0 = arith.constant 0 : i32
    return %arg0, %c0_i32 : i32, i32
  }
  func.func @transform_16(%arg0: i32) -> (i32, i32) {
    %c0_i32 = arith.constant 0 : i32
    %c0_i32_0 = arith.constant 0 : i32
    return %arg0, %c0_i32 : i32, i32
  }
  func.func @transform_17(%arg0: i32) -> (i32, i32) {
    %c0_i32 = arith.constant 0 : i32
    %c0_i32_0 = arith.constant 0 : i32
    return %arg0, %c0_i32 : i32, i32
  }
  func.func @transform_18(%arg0: i32) -> (i32, i32) {
    %c0_i32 = arith.constant 0 : i32
    %c0_i32_0 = arith.constant 0 : i32
    return %arg0, %c0_i32 : i32, i32
  }
}

</mosaic_0001>

<bundles_post_ra>
// kernel: vae_decoder2_forward.1
= control target key start
LH: loop header
LB: loop body
LE: loop exit
PB: predicated region body
PF: predicated region fallthrough
CT: control target
= control target key end

     0   :  { %s1831_s0 = inlined_call_operand.vmem [shape: f32[8,128], index: 0, kind: input, shape index: {}]   ;;  %s1832_s1 = inlined_call_operand.vmem [shape: f32[8,128], index: 1, kind: input, shape index: {}]   ;;  %s1833_s2 = inlined_call_operand.vmem [shape: f32[8,128], index: 2, kind: input, shape index: {}]   ;;  %s1834_s3 = inlined_call_operand.vmem [shape: bf16[128,128], index: 3, kind: input, shape index: {}]   ;;  %s1835_s4 = inlined_call_operand.vmem [shape: f32[1,128], index: 4, kind: input, shape index: {}]   ;;  %s1836_s5 = inlined_call_operand.vmem [shape: bf16[128,128], index: 5, kind: input, shape index: {}]   ;;  %s1837_s6 = inlined_call_operand.vmem [shape: f32[1,128], index: 6, kind: input, shape index: {}]   ;;  %s1838_s7 = inlined_call_operand.vmem [shape: bf16[128,256], index: 7, kind: input, shape index: {}]   ;;  %s1839_s8 = inlined_call_operand.vmem [shape: f32[1,256], index: 8, kind: input, shape index: {}]   ;;  %s1840_s9 = inlined_call_operand.vmem [shape: bf16[128,256], index: 9, kind: input, shape index: {}]   ;;  %s1841_s10 = inlined_call_operand.vmem [shape: f32[1,256], index: 10, kind: input, shape index: {}]   ;;  %s1842_s11 = inlined_call_operand.vmem [shape: bf16[256,256], index: 11, kind: input, shape index: {}]   ;;  %s1843_s12 = inlined_call_operand.vmem [shape: f32[1,256], index: 12, kind: input, shape index: {}]   ;;  %s1844_s13 = inlined_call_operand.vmem [shape: bf16[256,128], index: 13, kind: input, shape index: {}]   ;;  %s1845_s14 = inlined_call_operand.vmem [shape: f32[1,128], index: 14, kind: input, shape index: {}]   ;;  %s1846_s15 = inlined_call_operand.hbm [shape: f32[8,128], index: 15, kind: output, shape index: {0}]   ;;  %s1847_s16 = inlined_call_operand.hbm [shape: f32[8,128], index: 16, kind: output, shape index: {1}]   ;;  %s1848_s17 = inlined_call_operand.hbm [shape: f32[8,128], index: 17, kind: output, shape index: {2}]   ;;  %s1849_s18 = inlined_call_operand.hbm [shape: f32[8,128], index: 18, kind: output, shape index: {3}]  }
   0x1   :  { %1850 = sst [smem:[#allocation12_spill]] %s1831_s0 }
   0x2   :  { %1851 = sst [smem:[#allocation13_spill]] %s1832_s1 }
   0x3   :  { %1852 = sst [smem:[#allocation14_spill]] %s1833_s2 }
   0x4   :  { %24 = vsyncpa [#allocation3], 0 }
   0x5   :  { %25 = vsyncpa [#allocation5], 0  ;;  %v1074_v0 = vld [vmem:[%s1834_s3 + $0x38] sm:$0xff]   ;;  %v1073_v1 = vld [vmem:[%s1834_s3 + $0x30] sm:$0xff]   ;;  %v1346_v2 = vmov 0.0   ;;  %vm1347_vm0 = vmmov 0  }
   0x6   :  { %1166 = vmatprep.subr.mxu0 %v1346_v2  ;;  %v970_v3 = vunpack.c.l.bf16 %v1074_v0  ;;  %v971_v4 = vunpack.c.h.bf16 %v1074_v0  ;;  %1198 = vmatprep.mubr.msk.f32.mxu0 %vm1347_vm0, %v1346_v2  ;;  %v967_v5 = vunpack.c.h.bf16 %v1073_v1  ;;  %v1081_v6 = vld [vmem:[%s1836_s5 + $0x38] sm:$0xff]   ;;  %v1072_v7 = vld [vmem:[%s1834_s3 + $0x28] sm:$0xff]   ;;  %v1080_v8 = vld [vmem:[%s1836_s5 + $0x30] sm:$0xff]  }
   0x7   :  { %1201 = vmatprep.subr.mxu1 %v1346_v2  ;;  %1233 = vmatprep.mubr.msk.f32.mxu1 %vm1347_vm0, %v1346_v2 }
   0x8   :  { %1167 = vmatpush3.msra.mxu0 %v971_v4 }
   0x9   :  { %1168 = vmatprep.subr.mxu0 %v1346_v2 }
   0xa   :  { %26 = vsyncpa [#allocation8], 0  ;;  %1169 = vmatpush3.msra.mxu0 %v970_v3  ;;  %v966_v9 = vunpack.c.l.bf16 %v1073_v1  ;;  %v1002_v10 = vunpack.c.l.bf16 %v1081_v6  ;;  %v1003_v11 = vunpack.c.h.bf16 %v1081_v6  ;;  %v963_v12 = vunpack.c.h.bf16 %v1072_v7  ;;  %v1071_v14 = vld [vmem:[%s1834_s3 + $0x20] sm:$0xff]   ;;  %v1079_v15 = vld [vmem:[%s1836_s5 + $0x28] sm:$0xff]   ;;  %s1853_s23 = sld [smem:[#allocation13_spill]] }
   0xb   :  { %1170 = vmatprep.subr.mxu0 %v1346_v2  ;;  %v999_v13 = vunpack.c.h.bf16 %v1080_v8  ;;  %v962_v16 = vunpack.c.l.bf16 %v1072_v7  ;;  %v998_v17 = vunpack.c.l.bf16 %v1080_v8  ;;  %v959_v18 = vunpack.c.h.bf16 %v1071_v14  ;;  %v1070_v20 = vld [vmem:[%s1834_s3 + $0x18] sm:$0xff]   ;;  %v1078_v21 = vld [vmem:[%s1836_s5 + $0x20] sm:$0xff]   ;;  %v1069_v26 = vld [vmem:[%s1834_s3 + $0x10] sm:$0xff]   ;;  %s1854_s30 = sld [smem:[#allocation12_spill]] }
   0xc   :  { %1171 = vmatpush3.msra.mxu0 %v967_v5  ;;  %1202 = vmatpush3.msra.mxu1 %v1003_v11  ;;  %v995_v19 = vunpack.c.h.bf16 %v1079_v15  ;;  %v958_v22 = vunpack.c.l.bf16 %v1071_v14  ;;  %v994_v23 = vunpack.c.l.bf16 %v1079_v15  ;;  %v955_v24 = vunpack.c.h.bf16 %v1070_v20  ;;  %v1068_v29 = vld [vmem:[%s1834_s3 + $0x8] sm:$0xff]   ;;  %v941_v32 = vld [vmem:[%s1834_s3] sm:$0xff]   ;;  %v1077_v38 = vld [vmem:[%s1836_s5 + $0x18] sm:$0xff]   ;;  %s1855_s2 = sld [smem:[#allocation14_spill]] }
   0xd   :  { %1172 = vmatprep.subr.mxu0 %v1346_v2  ;;  %1203 = vmatprep.subr.mxu1 %v1346_v2  ;;  %v991_v25 = vunpack.c.h.bf16 %v1078_v21  ;;  %v954_v27 = vunpack.c.l.bf16 %v1070_v20  ;;  %v951_v28 = vunpack.c.h.bf16 %v1069_v26  ;;  %v950_v30 = vunpack.c.l.bf16 %v1069_v26  ;;  %v1076_v41 = vld [vmem:[%s1836_s5 + $0x10] sm:$0xff]   ;;  %v1075_v42 = vld [vmem:[%s1836_s5 + $0x8] sm:$0xff]   ;;  %v973_v46 = vld [vmem:[%s1836_s5] sm:$0xff]  }
   0xe   :  { %1173 = vmatpush3.msra.mxu0 %v966_v9  ;;  %1204 = vmatpush3.msra.mxu1 %v1002_v10  ;;  %v947_v31 = vunpack.c.h.bf16 %v1068_v29  ;;  %v946_v33 = vunpack.c.l.bf16 %v1068_v29  ;;  %v943_v34 = vunpack.c.h.bf16 %v941_v32  ;;  %v942_v35 = vunpack.c.l.bf16 %v941_v32  ;;  %v431_v50 = vld [vmem:[%s1840_s9 + $0x78] sm:$0xff]  ;;  %v292_v53 = vld [vmem:[%s1838_s7 + $0x70] sm:$0xff]  ;;  %v291_v54 = vld [vmem:[%s1838_s7 + $0x68] sm:$0xff] }
   0xf   :  { %1174 = vmatprep.subr.mxu0 %v1346_v2  ;;  %1205 = vmatprep.subr.mxu1 %v1346_v2  ;;  %v990_v37 = vunpack.c.l.bf16 %v1078_v21  ;;  %v987_v39 = vunpack.c.h.bf16 %v1077_v38  ;;  %v986_v40 = vunpack.c.l.bf16 %v1077_v38  ;;  %v983_v43 = vunpack.c.h.bf16 %v1076_v41  ;;  %v293_v52 = vld [vmem:[%s1838_s7 + $0x78] sm:$0xff]  ;;  %v290_v59 = vld [vmem:[%s1838_s7 + $0x60] sm:$0xff]  ;;  %v288_v1 = vld [vmem:[%s1838_s7 + $0x50] sm:$0xff] }
  0x10   :  { %1175 = vmatpush3.msra.mxu0 %v963_v12  ;;  %1206 = vmatpush3.msra.mxu1 %v999_v13  ;;  %v57_v36 = vld [vmem:[%s1853_s23] sm:$0xff]  ;;  %v982_v44 = vunpack.c.l.bf16 %v1076_v41  ;;  %v979_v45 = vunpack.c.h.bf16 %v1075_v42  ;;  %v978_v47 = vunpack.c.l.bf16 %v1075_v42  ;;  %v975_v48 = vunpack.c.h.bf16 %v973_v46  ;;  %v289_v62 = vld [vmem:[%s1838_s7 + $0x58] sm:$0xff]  ;;  %v287_v5 = vld [vmem:[%s1838_s7 + $0x48] sm:$0xff] }
  0x11   :  { %1176 = vmatprep.subr.mxu0 %v1346_v2  ;;  %1207 = vmatprep.subr.mxu1 %v1346_v2  ;;  %v974_v49 = vunpack.c.l.bf16 %v973_v46  ;;  %v463_v51 = vunpack.c.h.bf16 %v431_v50  ;;  %v324_v55 = vunpack.c.l.bf16 %v293_v52  ;;  %v325_v56 = vunpack.c.h.bf16 %v293_v52  ;;  %v286_v8 = vld [vmem:[%s1838_s7 + $0x40] sm:$0xff]  ;;  %v427_v26 = vld [vmem:[%s1840_s9 + $0x58] sm:$0xff]  ;;  %v426_v29 = vld [vmem:[%s1840_s9 + $0x50] sm:$0xff] }
  0x12   :  { %1177 = vmatpush3.msra.mxu0 %v962_v16  ;;  %1208 = vmatpush3.msra.mxu1 %v998_v17  ;;  %v323_v57 = vunpack.c.h.bf16 %v292_v53  ;;  %v322_v58 = vunpack.c.l.bf16 %v292_v53  ;;  %v321_v60 = vunpack.c.h.bf16 %v291_v54  ;;  %v320_v61 = vunpack.c.l.bf16 %v291_v54  ;;  %v936_v13 = vld [vmem:[%s1835_s4] ss:$0 sm:$0xff]  ;;  %v430_v17 = vld [vmem:[%s1840_s9 + $0x70] sm:$0xff]  ;;  %v425_v32 = vld [vmem:[%s1840_s9 + $0x48] sm:$0xff]  ;;  %s1348_s4 = smov [#allocation4]  }
  0x13   :  { %1178 = vmatprep.subr.mxu0 %v1346_v2  ;;  %1209 = vmatprep.subr.mxu1 %v1346_v2  ;;  %v319_v63 = vunpack.c.h.bf16 %v290_v59  ;;  %v318_v0 = vunpack.c.l.bf16 %v290_v59  ;;  %v317_v3 = vunpack.c.h.bf16 %v289_v62  ;;  %v316_v4 = vunpack.c.l.bf16 %v289_v62  ;;  %v420_v46 = vld [vmem:[%s1840_s9 + $0x20] sm:$0xff]  ;;  %v418_v52 = vld [vmem:[%s1840_s9 + $0x10] sm:$0xff]  ;;  %s897_s3 = sshll.u32 %s1348_s4, 4  ;;  %s898_s3 = int_to_ptr.vmem [resolvable:$true] %s897_s3 }
  0x14   :  { %1179 = vmatpush3.msra.mxu0 %v959_v18  ;;  %1210 = vmatpush3.msra.mxu1 %v995_v19  ;;  %v315_v6 = vunpack.c.h.bf16 %v288_v1  ;;  %v314_v7 = vunpack.c.l.bf16 %v288_v1  ;;  %v313_v9 = vunpack.c.h.bf16 %v287_v5  ;;  %v312_v10 = vunpack.c.l.bf16 %v287_v5  ;;  %v429_v19 = vld [vmem:[%s1840_s9 + $0x68] sm:$0xff]  ;;  %s1260_s24 = scalar_lea.vmem %s898_s3, 128  ;;  %p1265_p1 = scmp.lt.s32.totalorder %s898_s3, %s898_s3 }
  0x15   :  { %1180 = vmatprep.subr.mxu0 %v1346_v2  ;;  %1211 = vmatprep.subr.mxu1 %v1346_v2  ;;  %v311_v11 = vunpack.c.h.bf16 %v286_v8  ;;  %v310_v12 = vunpack.c.l.bf16 %v286_v8  ;;  %v462_v18 = vunpack.c.l.bf16 %v431_v50  ;;  %v461_v20 = vunpack.c.h.bf16 %v430_v17  ;;  %p1261_p0 = scmp.ne.s32.totalorder %s898_s3, %s1260_s24  ;;  %p1266_p2 = scmp.lt.s32.totalorder %s1260_s24, %s1260_s24 }
  0x16   :  { %1181 = vmatpush3.msra.mxu0 %v958_v22  ;;  %1212 = vmatpush3.msra.mxu1 %v994_v23  ;;  %v460_v22 = vunpack.c.l.bf16 %v430_v17  ;;  %v428_v23 = vld [vmem:[%s1840_s9 + $0x60] sm:$0xff]  ;;  %v441_v50 = vunpack.c.h.bf16 %v420_v46  ;;  %v279_v17 = vld [vmem:[%s1838_s7 + $0x8] sm:$0xff] }
  0x17   :  { %1182 = vmatprep.subr.mxu0 %v1346_v2  ;;  %1213 = vmatprep.subr.mxu1 %v1346_v2  ;;  %p1267_p3 = por %p1266_p2, %p1265_p1 }
  0x18   :  { %1183 = vmatpush3.msra.mxu0 %v955_v24  ;;  %1214 = vmatpush3.msra.mxu1 %v991_v25  ;;  %v459_v24 = vunpack.c.h.bf16 %v429_v19  ;;  %v458_v25 = vunpack.c.l.bf16 %v429_v19 }
  0x19   :  { %1184 = vmatprep.subr.mxu0 %v1346_v2  ;;  %1215 = vmatprep.subr.mxu1 %v1346_v2  ;;  %p1268_p4 = pnand %p1267_p3, %p1261_p0 }
  0x1a   :  { %1185 = vmatpush3.msra.mxu0 %v954_v27  ;;  %1216 = vmatpush3.msra.mxu1 %v990_v37  ;;  %v457_v27 = vunpack.c.h.bf16 %v428_v23  ;;  %v423_v37 = vld [vmem:[%s1840_s9 + $0x38] sm:$0xff] }
  0x1b   :  { %1186 = vmatprep.subr.mxu0 %v1346_v2  ;;  %1217 = vmatprep.subr.mxu1 %v1346_v2  ;;  %v447_v41 = vunpack.c.h.bf16 %v423_v37  ;;  %v446_v42 = vunpack.c.l.bf16 %v423_v37 }
  0x1c   :  { %1187 = vmatpush3.msra.mxu0 %v951_v28  ;;  %1218 = vmatpush3.msra.mxu1 %v987_v39  ;;  %v456_v28 = vunpack.c.l.bf16 %v428_v23  ;;  %v564_v23 = vld [vmem:[%s1842_s11 + $0x78] sm:$0xff] }
  0x1d   :  { %1188 = vmatprep.subr.mxu0 %v1346_v2  ;;  %1219 = vmatprep.subr.mxu1 %v1346_v2 }
  0x1e   :  { %1189 = vmatpush3.msra.mxu0 %v950_v30  ;;  %1220 = vmatpush3.msra.mxu1 %v986_v40  ;;  %v455_v30 = vunpack.c.h.bf16 %v427_v26  ;;  %v422_v40 = vld [vmem:[%s1840_s9 + $0x30] sm:$0xff] }
  0x1f   :  { %1190 = vmatprep.subr.mxu0 %v1346_v2  ;;  %1221 = vmatprep.subr.mxu1 %v1346_v2 }
  0x20   :  { %1191 = vmatpush3.msra.mxu0 %v947_v31  ;;  %1222 = vmatpush3.msra.mxu1 %v983_v43  ;;  %v454_v31 = vunpack.c.l.bf16 %v427_v26  ;;  %v421_v43 = vld [vmem:[%s1840_s9 + $0x28] sm:$0xff]  ;;  %v612_v26 = vunpack.c.h.bf16 %v564_v23 }
  0x21   :  { %1192 = vmatprep.subr.mxu0 %v1346_v2  ;;  %1223 = vmatprep.subr.mxu1 %v1346_v2 }
  0x22   :  { %1193 = vmatpush3.msra.mxu0 %v946_v33  ;;  %1224 = vmatpush3.msra.mxu1 %v982_v44  ;;  %v453_v33 = vunpack.c.h.bf16 %v426_v29  ;;  %v445_v44 = vunpack.c.h.bf16 %v422_v40 }
  0x23   :  { %1194 = vmatprep.subr.mxu0 %v1346_v2  ;;  %1225 = vmatprep.subr.mxu1 %v1346_v2 }
  0x24   :  { %1195 = vmatpush3.msra.mxu0 %v943_v34  ;;  %1226 = vmatpush3.msra.mxu1 %v979_v45  ;;  %v424_v34 = vld [vmem:[%s1840_s9 + $0x40] sm:$0xff]  ;;  %v444_v45 = vunpack.c.l.bf16 %v422_v40 }
  0x25   :  { %1196 = vmatprep.subr.mxu0 %v1346_v2  ;;  %1227 = vmatprep.subr.mxu1 %v1346_v2  ;;  %v449_v38 = vunpack.c.h.bf16 %v424_v34  ;;  %v448_v39 = vunpack.c.l.bf16 %v424_v34 }
  0x26   :  { %1197 = vmatpush3.msra.mxu0 %v942_v35  ;;  %1228 = vmatpush3.msra.mxu1 %v978_v47  ;;  %v451_v35 = vunpack.c.h.bf16 %v425_v32  ;;  %v443_v47 = vunpack.c.h.bf16 %v421_v43 }
  0x27   :  { %1199 = vmatmul.mubr.f32.vlgmr.msra.gmra.mxu0 %v57_v36  ;;  %1229 = vmatprep.subr.mxu1 %v1346_v2  ;;  %v450_v36 = vunpack.c.l.bf16 %v425_v32  ;;  %v611_v32 = vunpack.c.l.bf16 %v564_v23  ;;  %v579_v23 = vld [vmem:[%s1842_s11 + $0xf0] sm:$0xff] }
  0x28   :  { %402 = vmatprep.mubr.f32.mxu0 %v1346_v2  ;;  %1230 = vmatpush3.msra.mxu1 %v975_v48  ;;  %v442_v48 = vunpack.c.l.bf16 %v421_v43  ;;  %v559_v43 = vld [vmem:[%s1842_s11 + $0x50] sm:$0xff] }
  0x29   :  { %1231 = vmatprep.subr.mxu1 %v1346_v2  ;;  %338 = vmatprep.subr.mxu0 %v325_v56  ;;  %v437_v56 = vunpack.c.h.bf16 %v418_v52 }
  0x2a   :  { %1232 = vmatpush3.msra.mxu1 %v974_v49  ;;  %339 = vmatpush1.msra.mxu0 %v324_v55  ;;  %v419_v49 = vld [vmem:[%s1840_s9 + $0x18] sm:$0xff]  ;;  %v417_v55 = vld [vmem:[%s1840_s9 + $0x8] sm:$0xff] }
  0x2b   :  { %476 = vmatprep.subr.mxu1 %v463_v51  ;;  %340 = vmatprep.subr.mxu0 %v323_v57  ;;  %v440_v51 = vunpack.c.l.bf16 %v420_v46  ;;  %v439_v53 = vunpack.c.h.bf16 %v419_v49  ;;  %v438_v54 = vunpack.c.l.bf16 %v419_v49  ;;  %v436_v57 = vunpack.c.l.bf16 %v418_v52  ;;  %v558_v46 = vld [vmem:[%s1842_s11 + $0x48] sm:$0xff] }
  0x2c   :  { %341 = vmatpush1.msra.mxu0 %v322_v58  ;;  %v416_v58 = vld [vmem:[%s1840_s9] sm:$0xff]  ;;  %v435_v59 = vunpack.c.h.bf16 %v417_v55  ;;  %v601_v49 = vunpack.c.l.bf16 %v559_v43  ;;  %v599_v52 = vunpack.c.l.bf16 %v558_v46 }
  0x2d   :  { %342 = vmatprep.subr.mxu0 %v321_v60  ;;  %v434_v60 = vunpack.c.l.bf16 %v417_v55  ;;  %v432_v62 = vunpack.c.l.bf16 %v416_v58 }
  0x2e   :  { %343 = vmatpush1.msra.mxu0 %v320_v61  ;;  %v433_v61 = vunpack.c.h.bf16 %v416_v58  ;;  %v1677_v58 = vld [vmem:[%s1841_s10] sm:$0x3] }
  0x2f   :  { %344 = vmatprep.subr.mxu0 %v319_v63  ;;  %v415_v63 = vld [vmem:[%s1854_s30] sm:$0xff] }
  0x30   :  { %345 = vmatpush1.msra.mxu0 %v318_v0  ;;  %v285_v0 = vld [vmem:[%s1838_s7 + $0x38] sm:$0xff] }
  0x31   :  { %346 = vmatprep.subr.mxu0 %v317_v3  ;;  %v309_v1 = vunpack.c.h.bf16 %v285_v0  ;;  %v308_v3 = vunpack.c.l.bf16 %v285_v0 }
  0x32   :  { %347 = vmatpush1.msra.mxu0 %v316_v4  ;;  %v284_v4 = vld [vmem:[%s1838_s7 + $0x30] sm:$0xff] }
  0x33   :  { %348 = vmatprep.subr.mxu0 %v315_v6  ;;  %v307_v5 = vunpack.c.h.bf16 %v284_v4  ;;  %v306_v6 = vunpack.c.l.bf16 %v284_v4 }
  0x34   :  { %349 = vmatpush1.msra.mxu0 %v314_v7  ;;  %v283_v7 = vld [vmem:[%s1838_s7 + $0x28] sm:$0xff] }
  0x35   :  { %350 = vmatprep.subr.mxu0 %v313_v9  ;;  %v305_v8 = vunpack.c.h.bf16 %v283_v7  ;;  %v304_v9 = vunpack.c.l.bf16 %v283_v7 }
  0x36   :  { %351 = vmatpush1.msra.mxu0 %v312_v10  ;;  %v282_v10 = vld [vmem:[%s1838_s7 + $0x20] sm:$0xff] }
  0x37   :  { %352 = vmatprep.subr.mxu0 %v311_v11  ;;  %v281_v11 = vld [vmem:[%s1838_s7 + $0x18] sm:$0xff] }
  0x38   :  { %353 = vmatpush1.msra.mxu0 %v310_v12  ;;  %v280_v12 = vld [vmem:[%s1838_s7 + $0x10] sm:$0xff] }
  0x39   :  { %354 = vmatprep.subr.mxu0 %v309_v1  ;;  %v298_v19 = vunpack.c.l.bf16 %v280_v12  ;;  %v553_v1 = vld [vmem:[%s1842_s11 + $0x20] sm:$0xff] }
  0x3a   :  { %355 = vmatpush1.msra.mxu0 %v308_v3 }
  0x3b   :  { %356 = vmatprep.subr.mxu0 %v307_v5 }
  0x3c   :  { %357 = vmatpush1.msra.mxu0 %v306_v6  ;;  %v552_v6 = vld [vmem:[%s1842_s11 + $0x18] sm:$0xff] }
  0x3d   :  { %358 = vmatprep.subr.mxu0 %v305_v8  ;;  %v590_v8 = vunpack.c.h.bf16 %v553_v1 }
  0x3e   :  { %359 = vmatpush1.msra.mxu0 %v304_v9 }
  0xe7   :  { %v163_v14 = vpop.f32.mrf.mxu0 }
  0xe8   :  { %v164_v15 = vadd.f32 %v936_v13, %v163_v14  ;;  %v302_v13 = vunpack.c.l.bf16 %v282_v10  ;;  %v303_v14 = vunpack.c.h.bf16 %v282_v10  ;;  %v589_v10 = vunpack.c.l.bf16 %v553_v1 }
  0xe9   :  { %v1200_v16 = vpop.f32.mrf.mxu0 }
  0xea   :  { %1242 = vtanh.f32 %v164_v15  ;;  %v301_v15 = vunpack.c.h.bf16 %v281_v11  ;;  %v300_v16 = vunpack.c.l.bf16 %v281_v11  ;;  %360 = vmatprep.subr.mxu0 %v303_v14  ;;  %v551_v11 = vld [vmem:[%s1842_s11 + $0x10] sm:$0xff]  ;;  %v550_v14 = vld [vmem:[%s1842_s11 + $0x8] sm:$0xff] }
  0xeb   :  { %361 = vmatpush1.msra.mxu0 %v302_v13  ;;  %v587_v13 = vunpack.c.l.bf16 %v552_v6 }
  0xec   :  { %362 = vmatprep.subr.mxu0 %v301_v15  ;;  %v586_v15 = vunpack.c.h.bf16 %v551_v11 }
  0xed   :  { %363 = vmatpush1.msra.mxu0 %v300_v16  ;;  %v585_v16 = vunpack.c.l.bf16 %v551_v11 }
  0xf7   :  { %v1243_v21 = vpop.eup %1242 }
  0xf8   :  { %1234 = vmatmul.mubr.f32.vlgmr.msra.gmra.mxu1 %v1243_v21  ;;  %v297_v21 = vunpack.c.h.bf16 %v279_v17 }
  0xf9   :  { %477 = vmatpush1.msra.mxu1 %v462_v18  ;;  %540 = vmatprep.mubr.f32.mxu1 %v1346_v2  ;;  %v452_v2 = vunpack.c.l.bf16 %v426_v29  ;;  %v299_v18 = vunpack.c.h.bf16 %v280_v12  ;;  %v588_v12 = vunpack.c.h.bf16 %v552_v6  ;;  %v565_v6 = vld [vmem:[%s1842_s11 + $0x80] sm:$0xff] }
  0xfa   :  { %478 = vmatprep.subr.mxu1 %v461_v20  ;;  %v278_v20 = vld [vmem:[%s1838_s7] sm:$0xff] }
  0xfb   :  { %479 = vmatpush1.msra.mxu1 %v460_v22  ;;  %v296_v22 = vunpack.c.l.bf16 %v279_v17  ;;  %364 = vmatprep.subr.mxu0 %v299_v18  ;;  %v549_v17 = vld [vmem:[%s1842_s11] sm:$0xff]  ;;  %v584_v18 = vunpack.c.h.bf16 %v550_v14 }
  0xfc   :  { %480 = vmatprep.subr.mxu1 %v459_v24  ;;  %v295_v24 = vunpack.c.h.bf16 %v278_v20  ;;  %365 = vmatpush1.msra.mxu0 %v298_v19  ;;  %v583_v19 = vunpack.c.l.bf16 %v550_v14  ;;  %v1095_v14 = vld [vmem:[%s1844_s13 + $0x70] sm:$0xff]  }
  0xfd   :  { %481 = vmatpush1.msra.mxu1 %v458_v25  ;;  %v294_v25 = vunpack.c.l.bf16 %v278_v20  ;;  %366 = vmatprep.subr.mxu0 %v297_v21  ;;  %v580_v20 = vld [vmem:[%s1842_s11 + $0xf8] sm:$0xff]  ;;  %v582_v21 = vunpack.c.h.bf16 %v549_v17 }
  0xfe   :  { %482 = vmatprep.subr.mxu1 %v457_v27  ;;  %367 = vmatpush1.msra.mxu0 %v296_v22  ;;  %v937_v27 = vld [vmem:[%s1837_s6] ss:$0 sm:$0xff]  ;;  %v581_v22 = vunpack.c.l.bf16 %v549_v17 }
  0xff   :  { %483 = vmatpush1.msra.mxu1 %v456_v28  ;;  %368 = vmatprep.subr.mxu0 %v295_v24  ;;  %v644_v24 = vunpack.c.h.bf16 %v580_v20 }
 0x100   :  { %484 = vmatprep.subr.mxu1 %v455_v30  ;;  %369 = vmatpush1.msra.mxu0 %v294_v25  ;;  %v643_v25 = vunpack.c.l.bf16 %v580_v20  ;;  %v1063_v20 = vunpack.c.h.bf16 %v1095_v14 }
 0x101   :  { %485 = vmatpush1.msra.mxu1 %v454_v31  ;;  %657 = vmatprep.subr.mxu0 %v612_v26  ;;  %v563_v31 = vld [vmem:[%s1842_s11 + $0x70] sm:$0xff]  ;;  %v578_v26 = vld [vmem:[%s1842_s11 + $0xe8] sm:$0xff] }
 0x102   :  { %486 = vmatprep.subr.mxu1 %v453_v33  ;;  %v562_v33 = vld [vmem:[%s1842_s11 + $0x68] sm:$0xff] }
 0x103   :  { %487 = vmatpush1.msra.mxu1 %v452_v2  ;;  %v610_v2 = vunpack.c.h.bf16 %v563_v31  ;;  %v608_v37 = vunpack.c.h.bf16 %v562_v33 }
 0x104   :  { %488 = vmatprep.subr.mxu1 %v451_v35  ;;  %v609_v35 = vunpack.c.l.bf16 %v563_v31 }
 0x105   :  { %489 = vmatpush1.msra.mxu1 %v450_v36  ;;  %v561_v36 = vld [vmem:[%s1842_s11 + $0x60] sm:$0xff] }
 0x106   :  { %490 = vmatprep.subr.mxu1 %v449_v38  ;;  %v607_v38 = vunpack.c.l.bf16 %v562_v33  ;;  %v606_v40 = vunpack.c.h.bf16 %v561_v36  ;;  %v576_v33 = vld [vmem:[%s1842_s11 + $0xd8] sm:$0xff] }
 0x107   :  { %491 = vmatpush1.msra.mxu1 %v448_v39  ;;  %v560_v39 = vld [vmem:[%s1842_s11 + $0x58] sm:$0xff] }
 0x108   :  { %492 = vmatprep.subr.mxu1 %v447_v41  ;;  %v328_v41 = vlaneseq }
 0x109   :  { %493 = vmatpush1.msra.mxu1 %v446_v42  ;;  %v605_v42 = vunpack.c.l.bf16 %v561_v36  ;;  %v636_v36 = vunpack.c.h.bf16 %v576_v33 }
 0x10a   :  { %494 = vmatprep.subr.mxu1 %v445_v44  ;;  %v604_v44 = vunpack.c.h.bf16 %v560_v39 }
 0x10b   :  { %495 = vmatpush1.msra.mxu1 %v444_v45  ;;  %v603_v45 = vunpack.c.l.bf16 %v560_v39 }
 0x10c   :  { %496 = vmatprep.subr.mxu1 %v443_v47  ;;  %v602_v47 = vunpack.c.h.bf16 %v559_v43 }
 0x10d   :  { %497 = vmatpush1.msra.mxu1 %v442_v48  ;;  %v1660_v48 = vshrl.u32 %v328_v41, 7 }
 0x10e   :  { %498 = vmatprep.subr.mxu1 %v441_v50  ;;  %v557_v50 = vld [vmem:[%s1842_s11 + $0x40] sm:$0xff] }
 0x10f   :  { %499 = vmatpush1.msra.mxu1 %v440_v51  ;;  %v600_v51 = vunpack.c.h.bf16 %v558_v46  ;;  %v1669_v55 = vsub.s32 1, %v1660_v48  ;;  %v1723_v39 = vsub.s32 0, %v1660_v48 }
 0x110   :  { %500 = vmatprep.subr.mxu1 %v439_v53  ;;  %v556_v53 = vld [vmem:[%s1842_s11 + $0x38] sm:$0xff] }
 0x111   :  { %501 = vmatpush1.msra.mxu1 %v438_v54  ;;  %v598_v54 = vunpack.c.h.bf16 %v557_v50  ;;  %v469_v46 = vrot.slane %v1677_v58, %v1723_v39 }
 0x112   :  { %502 = vmatprep.subr.mxu1 %v437_v56  ;;  %v597_v56 = vunpack.c.l.bf16 %v557_v50 }
 0x113   :  { %503 = vmatpush1.msra.mxu1 %v436_v57  ;;  %v555_v57 = vld [vmem:[%s1842_s11 + $0x30] sm:$0xff] }
 0x114   :  { %504 = vmatprep.subr.mxu1 %v435_v59  ;;  %v596_v59 = vunpack.c.h.bf16 %v556_v53  ;;  %v593_v0 = vunpack.c.l.bf16 %v555_v57 }
 0x115   :  { %505 = vmatpush1.msra.mxu1 %v434_v60  ;;  %v595_v60 = vunpack.c.l.bf16 %v556_v53 }
 0x116   :  { %506 = vmatprep.subr.mxu1 %v433_v61  ;;  %v554_v61 = vld [vmem:[%s1842_s11 + $0x28] sm:$0xff] }
 0x117   :  { %507 = vmatpush1.msra.mxu1 %v432_v62  ;;  %v594_v62 = vunpack.c.h.bf16 %v555_v57  ;;  %v592_v4 = vunpack.c.h.bf16 %v554_v61  ;;  %v591_v5 = vunpack.c.l.bf16 %v554_v61  ;;  %v569_v57 = vld [vmem:[%s1842_s11 + $0xa0] sm:$0xff] }
 0x118   :  { %541 = vmatmul.mubr.f32.vlgmr.msra.gmra.mxu1 %v415_v63  ;;  %v473_v63 = vrot.slane %v1677_v58, %v1669_v55  ;;  %v622_v61 = vunpack.c.h.bf16 %v569_v57 }
 0x1b8   :  { %v273_v28 = vpop.f32.mrf.mxu1 }
 0x1b9   :  { %v274_v29 = vadd.f32 %v937_v27, %v273_v28  ;;  %v642_v27 = vunpack.c.h.bf16 %v579_v23  ;;  %v641_v28 = vunpack.c.l.bf16 %v579_v23  ;;  %v1062_v23 = vunpack.c.l.bf16 %v1095_v14 }
 0x1ba   :  { %v1235_v30 = vpop.f32.mrf.mxu1 }
 0x1bb   :  { %1244 = vtanh.f32 %v274_v29  ;;  %v577_v29 = vld [vmem:[%s1842_s11 + $0xe0] sm:$0xff]  ;;  %v640_v30 = vunpack.c.h.bf16 %v578_v26 }
 0x1c8   :  { %v1245_v34 = vpop.eup %1244 }
 0x1c9   :  { %403 = vmatmul.mubr.f32.vlgmr.msra.gmra.mxu0 %v1245_v34  ;;  %v637_v34 = vunpack.c.l.bf16 %v577_v29 }
 0x1ca   :  { %658 = vmatpush1.msra.mxu0 %v611_v32  ;;  %v639_v32 = vunpack.c.l.bf16 %v578_v26 }
 0x1cb   :  { %659 = vmatprep.subr.mxu0 %v610_v2  ;;  %v638_v2 = vunpack.c.h.bf16 %v577_v29 }
 0x1cc   :  { %660 = vmatpush1.msra.mxu0 %v609_v35  ;;  %v575_v35 = vld [vmem:[%s1842_s11 + $0xd0] sm:$0xff] }
 0x1cd   :  { %661 = vmatprep.subr.mxu0 %v608_v37  ;;  %v635_v37 = vunpack.c.l.bf16 %v576_v33  ;;  %v633_v41 = vunpack.c.l.bf16 %v575_v35 }
 0x1ce   :  { %662 = vmatpush1.msra.mxu0 %v607_v38  ;;  %v574_v38 = vld [vmem:[%s1842_s11 + $0xc8] sm:$0xff] }
 0x1cf   :  { %663 = vmatprep.subr.mxu0 %v606_v40  ;;  %v634_v40 = vunpack.c.h.bf16 %v575_v35  ;;  %v632_v43 = vunpack.c.h.bf16 %v574_v38  ;;  %v1092_v35 = vld [vmem:[%s1844_s13 + $0x58] sm:$0xff]  }
 0x1d0   :  { %664 = vmatpush1.msra.mxu0 %v605_v42  ;;  %v573_v42 = vld [vmem:[%s1842_s11 + $0xc0] sm:$0xff] }
 0x1d1   :  { %665 = vmatprep.subr.mxu0 %v604_v44  ;;  %v631_v44 = vunpack.c.l.bf16 %v574_v38  ;;  %v629_v48 = vunpack.c.l.bf16 %v573_v42 }
 0x1d2   :  { %666 = vmatpush1.msra.mxu0 %v603_v45  ;;  %v572_v45 = vld [vmem:[%s1842_s11 + $0xb8] sm:$0xff] }
 0x1d3   :  { %667 = vmatprep.subr.mxu0 %v602_v47  ;;  %v630_v47 = vunpack.c.h.bf16 %v573_v42  ;;  %v628_v50 = vunpack.c.h.bf16 %v572_v45  ;;  %v1091_v42 = vld [vmem:[%s1844_s13 + $0x50] sm:$0xff]  }
 0x1d4   :  { %668 = vmatpush1.msra.mxu0 %v601_v49  ;;  %v571_v49 = vld [vmem:[%s1842_s11 + $0xb0] sm:$0xff] }
 0x1d5   :  { %669 = vmatprep.subr.mxu0 %v600_v51  ;;  %v627_v51 = vunpack.c.l.bf16 %v572_v45  ;;  %v1047_v45 = vunpack.c.h.bf16 %v1091_v42 }
 0x1d6   :  { %670 = vmatpush1.msra.mxu0 %v599_v52  ;;  %v570_v52 = vld [vmem:[%s1842_s11 + $0xa8] sm:$0xff] }
 0x1d7   :  { %671 = vmatprep.subr.mxu0 %v598_v54  ;;  %v626_v54 = vunpack.c.h.bf16 %v571_v49  ;;  %v624_v58 = vunpack.c.h.bf16 %v570_v52 }
 0x1d8   :  { %672 = vmatpush1.msra.mxu0 %v597_v56  ;;  %v1687_v3 = vpop.f32.mrf.mxu1  ;;  %v625_v56 = vunpack.c.l.bf16 %v571_v49 }
 0x1d9   :  { %673 = vmatprep.subr.mxu0 %v596_v59  ;;  %v543_v53 = vadd.f32 %v1687_v3, %v469_v46  ;;  %v623_v59 = vunpack.c.l.bf16 %v570_v52  ;;  %v566_v3 = vld [vmem:[%s1842_s11 + $0x88] sm:$0xff]  ;;  %v1089_v52 = vld [vmem:[%s1844_s13 + $0x40] sm:$0xff]  }
 0x1da   :  { %674 = vmatpush1.msra.mxu0 %v595_v60  ;;  %v544_v7 = vpop.f32.mrf.mxu1  ;;  %v568_v60 = vld [vmem:[%s1842_s11 + $0x98] sm:$0xff] }
 0x1db   :  { %675 = vmatprep.subr.mxu0 %v594_v62  ;;  %v545_v9 = vadd.f32 %v544_v7, %v473_v63  ;;  %v621_v62 = vunpack.c.l.bf16 %v569_v57  ;;  %v567_v63 = vld [vmem:[%s1842_s11 + $0x90] sm:$0xff]  ;;  %v619_v1 = vunpack.c.l.bf16 %v568_v60  ;;  %v616_v7 = vunpack.c.h.bf16 %v566_v3 }
 0x1dc   :  { %676 = vmatpush1.msra.mxu0 %v593_v0  ;;  %v620_v0 = vunpack.c.h.bf16 %v568_v60  ;;  %v1039_v57 = vunpack.c.h.bf16 %v1089_v52 }
 0x1dd   :  { %677 = vmatprep.subr.mxu0 %v592_v4  ;;  %1246 = vtanh.f32 %v545_v9  ;;  %v618_v4 = vunpack.c.h.bf16 %v567_v63  ;;  %v614_v9 = vunpack.c.h.bf16 %v565_v6 }
 0x1de   :  { %678 = vmatpush1.msra.mxu0 %v591_v5  ;;  %1248 = vtanh.f32 %v543_v53  ;;  %v617_v5 = vunpack.c.l.bf16 %v567_v63 }
 0x1df   :  { %679 = vmatprep.subr.mxu0 %v590_v8  ;;  %v615_v8 = vunpack.c.l.bf16 %v566_v3 }
 0x1e0   :  { %680 = vmatpush1.msra.mxu0 %v589_v10  ;;  %v613_v10 = vunpack.c.l.bf16 %v565_v6 }
 0x1e1   :  { %681 = vmatprep.subr.mxu0 %v588_v12  ;;  %v1096_v12 = vld [vmem:[%s1844_s13 + $0x78] sm:$0xff]  }
 0x1e2   :  { %682 = vmatpush1.msra.mxu0 %v587_v13  ;;  %v1088_v13 = vld [vmem:[%s1844_s13 + $0x38] sm:$0xff]   ;;  %v1066_v17 = vunpack.c.l.bf16 %v1096_v12 }
 0x1e3   :  { %683 = vmatprep.subr.mxu0 %v586_v15  ;;  %v1067_v15 = vunpack.c.h.bf16 %v1096_v12 }
 0x1e4   :  { %684 = vmatpush1.msra.mxu0 %v585_v16  ;;  %v1035_v16 = vunpack.c.h.bf16 %v1088_v13 }
 0x1e5   :  { %685 = vmatprep.subr.mxu0 %v584_v18  ;;  %v1087_v18 = vld [vmem:[%s1844_s13 + $0x30] sm:$0xff]   ;;  %1131 = vmatprep.subr.mxu1 %v1067_v15 }
 0x1e6   :  { %686 = vmatpush1.msra.mxu0 %v583_v19  ;;  %v1034_v19 = vunpack.c.l.bf16 %v1088_v13  ;;  %1132 = vmatpush3.msra.mxu1 %v1035_v16 }
 0x1e7   :  { %687 = vmatprep.subr.mxu0 %v582_v21  ;;  %v1031_v21 = vunpack.c.h.bf16 %v1087_v18  ;;  %1133 = vmatprep.subr.mxu1 %v1066_v17 }
 0x1e8   :  { %688 = vmatpush1.msra.mxu0 %v581_v22  ;;  %v1094_v22 = vld [vmem:[%s1844_s13 + $0x68] sm:$0xff]   ;;  %1134 = vmatpush3.msra.mxu1 %v1034_v19 }
 0x1e9   :  { %689 = vmatprep.subr.mxu0 %v644_v24  ;;  %v1086_v24 = vld [vmem:[%s1844_s13 + $0x28] sm:$0xff]   ;;  %1135 = vmatprep.subr.mxu1 %v1063_v20  ;;  %v1059_v26 = vunpack.c.h.bf16 %v1094_v22 }
 0x1ea   :  { %v1247_v31 = vpop.eup %1246  ;;  %690 = vmatpush2.msra.mxu0 %v643_v25  ;;  %v1030_v25 = vunpack.c.l.bf16 %v1087_v18  ;;  %1136 = vmatpush3.msra.mxu1 %v1031_v21  ;;  %v1026_v29 = vunpack.c.l.bf16 %v1086_v24 }
 0x1eb   :  { %691 = vmatprep.subr.mxu0 %v642_v27  ;;  %721 = vmatprep.mubr.f32.mxu0 %v1247_v31  ;;  %v1249_v11 = vpop.eup %1248  ;;  %v1027_v27 = vunpack.c.h.bf16 %v1086_v24 }
 0x1ec   :  { %692 = vmatpush2.msra.mxu0 %v641_v28  ;;  %1137 = vmatprep.subr.mxu1 %v1062_v23  ;;  %v1058_v28 = vunpack.c.l.bf16 %v1094_v22 }
 0x1ed   :  { %693 = vmatprep.subr.mxu0 %v640_v30  ;;  %1138 = vmatpush3.msra.mxu1 %v1030_v25  ;;  %v1093_v30 = vld [vmem:[%s1844_s13 + $0x60] sm:$0xff]  }
 0x1ee   :  { %694 = vmatpush2.msra.mxu0 %v639_v32  ;;  %1139 = vmatprep.subr.mxu1 %v1059_v26  ;;  %v1055_v31 = vunpack.c.h.bf16 %v1093_v30  ;;  %v1085_v32 = vld [vmem:[%s1844_s13 + $0x20] sm:$0xff]  }
 0x1ef   :  { %695 = vmatprep.subr.mxu0 %v638_v2  ;;  %1140 = vmatpush3.msra.mxu1 %v1027_v27  ;;  %v1023_v33 = vunpack.c.h.bf16 %v1085_v32  ;;  %v1054_v2 = vunpack.c.l.bf16 %v1093_v30 }
 0x1f0   :  { %696 = vmatpush2.msra.mxu0 %v637_v34  ;;  %1141 = vmatprep.subr.mxu1 %v1058_v28  ;;  %v1022_v34 = vunpack.c.l.bf16 %v1085_v32 }
 0x1f1   :  { %697 = vmatprep.subr.mxu0 %v636_v36  ;;  %1142 = vmatpush3.msra.mxu1 %v1026_v29  ;;  %v1051_v36 = vunpack.c.h.bf16 %v1092_v35 }
 0x1f2   :  { %698 = vmatpush2.msra.mxu0 %v635_v37  ;;  %1143 = vmatprep.subr.mxu1 %v1055_v31  ;;  %v1084_v37 = vld [vmem:[%s1844_s13 + $0x18] sm:$0xff]  }
 0x1f3   :  { %699 = vmatprep.subr.mxu0 %v634_v40  ;;  %1144 = vmatpush3.msra.mxu1 %v1023_v33  ;;  %v1019_v38 = vunpack.c.h.bf16 %v1084_v37  ;;  %v1050_v40 = vunpack.c.l.bf16 %v1092_v35 }
 0x1f4   :  { %700 = vmatpush2.msra.mxu0 %v633_v41  ;;  %1145 = vmatprep.subr.mxu1 %v1054_v2  ;;  %v1018_v41 = vunpack.c.l.bf16 %v1084_v37 }
 0x1f5   :  { %701 = vmatprep.subr.mxu0 %v632_v43  ;;  %1146 = vmatpush3.msra.mxu1 %v1022_v34  ;;  %v1083_v43 = vld [vmem:[%s1844_s13 + $0x10] sm:$0xff]  }
 0x1f6   :  { %702 = vmatpush2.msra.mxu0 %v631_v44  ;;  %1147 = vmatprep.subr.mxu1 %v1051_v36  ;;  %v1090_v44 = vld [vmem:[%s1844_s13 + $0x48] sm:$0xff]   ;;  %v1015_v46 = vunpack.c.h.bf16 %v1083_v43  ;;  %v1014_v49 = vunpack.c.l.bf16 %v1083_v43 }
 0x1f7   :  { %703 = vmatprep.subr.mxu0 %v630_v47  ;;  %1148 = vmatpush3.msra.mxu1 %v1019_v38  ;;  %v1046_v47 = vunpack.c.l.bf16 %v1091_v42  ;;  %v1042_v53 = vunpack.c.l.bf16 %v1090_v44 }
 0x1f8   :  { %704 = vmatpush2.msra.mxu0 %v629_v48  ;;  %1149 = vmatprep.subr.mxu1 %v1050_v40  ;;  %v1082_v48 = vld [vmem:[%s1844_s13 + $0x8] sm:$0xff]  }
 0x1f9   :  { %705 = vmatprep.subr.mxu0 %v628_v50  ;;  %1150 = vmatpush3.msra.mxu1 %v1018_v41  ;;  %v1043_v50 = vunpack.c.h.bf16 %v1090_v44 }
 0x1fa   :  { %706 = vmatpush2.msra.mxu0 %v627_v51  ;;  %1151 = vmatprep.subr.mxu1 %v1047_v45  ;;  %v1011_v51 = vunpack.c.h.bf16 %v1082_v48 }
 0x1fb   :  { %707 = vmatprep.subr.mxu0 %v626_v54  ;;  %1152 = vmatpush3.msra.mxu1 %v1015_v46  ;;  %v1005_v54 = vld [vmem:[%s1844_s13] sm:$0xff]  }
 0x1fc   :  { %708 = vmatpush2.msra.mxu0 %v625_v56  ;;  %1153 = vmatprep.subr.mxu1 %v1046_v47  ;;  %v1010_v56 = vunpack.c.l.bf16 %v1082_v48  ;;  %v1006_v60 = vunpack.c.l.bf16 %v1005_v54 }
 0x1fd   :  { %709 = vmatprep.subr.mxu0 %v624_v58  ;;  %1154 = vmatpush3.msra.mxu1 %v1014_v49  ;;  %v1007_v58 = vunpack.c.h.bf16 %v1005_v54 }
 0x1fe   :  { %710 = vmatpush2.msra.mxu0 %v623_v59  ;;  %1155 = vmatprep.subr.mxu1 %v1043_v50  ;;  %v1038_v59 = vunpack.c.l.bf16 %v1089_v52 }
 0x1ff   :  { %711 = vmatprep.subr.mxu0 %v622_v61  ;;  %1156 = vmatpush3.msra.mxu1 %v1011_v51  ;;  %v326_v61 = vld [vmem:[%s1839_s8] sm:$0x3] }
 0x200   :  { %712 = vmatpush2.msra.mxu0 %v621_v62  ;;  %1157 = vmatprep.subr.mxu1 %v1042_v53  ;;  %v331_v62 = vrot.slane %v326_v61, %v1723_v39  ;;  %v335_v63 = vrot.slane %v326_v61, %v1669_v55 }
 0x201   :  { %713 = vmatprep.subr.mxu0 %v620_v0  ;;  %1158 = vmatpush3.msra.mxu1 %v1010_v56 }
 0x202   :  { %714 = vmatpush2.msra.mxu0 %v619_v1  ;;  %1159 = vmatprep.subr.mxu1 %v1039_v57 }
 0x203   :  { %715 = vmatprep.subr.mxu0 %v618_v4  ;;  %1160 = vmatpush3.msra.mxu1 %v1007_v58 }
 0x204   :  { %716 = vmatpush2.msra.mxu0 %v617_v5  ;;  %1161 = vmatprep.subr.mxu1 %v1038_v59 }
 0x205   :  { %717 = vmatprep.subr.mxu0 %v616_v7  ;;  %1162 = vmatpush3.msra.mxu1 %v1006_v60  ;;  %v412_v7 = vld [vmem:[%s1855_s2] sm:$0xff] }
 0x206   :  { %718 = vmatpush2.msra.mxu0 %v615_v8 }
 0x207   :  { %719 = vmatprep.subr.mxu0 %v614_v9 }
 0x208   :  { %720 = vmatpush2.msra.mxu0 %v613_v10 }
 0x209   :  { %722 = vmatmul.mubr.f32.vlgmr.msra.gmra.mxu0 %v1249_v11  ;;  %v645_v11 = vld [vmem:[%s1843_s12] sm:$0x3] }
 0x20a   :  { %v650_v12 = vrot.slane %v645_v11, %v1723_v39  ;;  %v654_v13 = vrot.slane %v645_v11, %v1669_v55 }
 0x289   :  { %v404_v0 = vpop.f32.mrf.mxu0 }
 0x28a   :  { %v405_v1 = vadd.f32 %v404_v0, %v331_v62 }
 0x28b   :  { %v406_v3 = vpop.f32.mrf.mxu0 }
 0x28c   :  { %879 = vst [vmem:[#allocation6] sm:$0xff] %v405_v1  ;;  %v407_v4 = vadd.f32 %v406_v3, %v335_v63 }
 0x28e   :  { %v409_v5 = vmul.f32 0.5, %v407_v4  ;;  %880 = vst [vmem:[#allocation7] sm:$0xff] %v407_v4 }
 0x290   :  { %v410_v6 = vmul.f32 1.442695, %v409_v5 }
 0x292   :  { %1250 = vpow2.f32 %v410_v6 }
 0x29f   :  { %v1251_v8 = vpop.eup %1250 }
 0x2a0   :  { %v413_v9 = vmul.f32 %v1251_v8, %v412_v7 }
 0x2a2   :  { %v414_v10 = vadd.f32 %v413_v9, %v405_v1 }
 0x2a4   :  { %878 = vst [vmem:[#allocation4] sm:$0xff] %v414_v10 }
 0x2c9   :  { %v723_v14 = vpop.f32.mrf.mxu0 }
 0x2ca   :  { %v724_v15 = vadd.f32 %v723_v14, %v650_v12 }
 0x2cb   :  { %v725_v16 = vpop.f32.mrf.mxu0 }
 0x2cc   :  { %v726_v17 = vadd.f32 %v725_v16, %v654_v13 }
 0x2ce   :  { %1252 = vtanh.f32 %v726_v17 }
 0x2cf   :  { %1254 = vtanh.f32 %v724_v15 }
 0x2db   :  { %v1253_v18 = vpop.eup %1252 }
 0x2dc   :  { %v1255_v19 = vpop.eup %1254  ;;  %865 = vmatprep.mubr.f32.mxu1 %v1253_v18 }
 0x2dd   :  { %866 = vmatmul.mubr.f32.vlgmr.msra.gmra.mxu1 %v1255_v19 }
 0x2de   :  { %1271 = shalt.err (!%p1268_p4)
}
 0x2df   :  { %900 = dma.vmem_to_hbm [thread:$0]  %s898_s3, 128, %s1847_s16, [#allocation5]  }
 0x2e0   :  { %s1349_s26 = smov [#allocation6]  }
 0x2e1   :  { %s907_s27 = sshll.u32 %s1349_s26, 4  ;;  %s908_s27 = int_to_ptr.vmem [resolvable:$true] %s907_s27 }
 0x2e2   :  { %s1280_s28 = scalar_lea.vmem %s908_s27, 128  ;;  %p1285_p6 = scmp.lt.s32.totalorder %s908_s27, %s908_s27 }
 0x2e3   :  { %p1281_p5 = scmp.ne.s32.totalorder %s908_s27, %s1280_s28  ;;  %p1286_p7 = scmp.lt.s32.totalorder %s1280_s28, %s1280_s28 }
 0x2e5   :  { %p1287_p8 = por %p1286_p7, %p1285_p6 }
 0x2e7   :  { %p1288_p9 = pnand %p1287_p8, %p1281_p5 }
 0x2e9   :  { %1291 = shalt.err (!%p1288_p9)
}
 0x2ea   :  { %910 = dma.vmem_to_hbm [thread:$0]  %s908_s27, 128, %s1848_s17, [#allocation5]  }
 0x2eb   :  { %s1350_s7 = smov [#allocation7]  }
 0x2ec   :  { %s917_s0 = sshll.u32 %s1350_s7, 4  ;;  %s918_s0 = int_to_ptr.vmem [resolvable:$true] %s917_s0 }
 0x2ed   :  { %s1300_s19 = scalar_lea.vmem %s918_s0, 128  ;;  %p1305_p11 = scmp.lt.s32.totalorder %s918_s0, %s918_s0 }
 0x2ee   :  { %p1301_p10 = scmp.ne.s32.totalorder %s918_s0, %s1300_s19  ;;  %p1306_p12 = scmp.lt.s32.totalorder %s1300_s19, %s1300_s19 }
 0x2f0   :  { %p1307_p13 = por %p1306_p12, %p1305_p11 }
 0x2f2   :  { %p1308_p0 = pnand %p1307_p13, %p1301_p10 }
 0x2f4   :  { %1311 = shalt.err (!%p1308_p0)
}
 0x2f5   :  { %920 = dma.vmem_to_hbm [thread:$0]  %s918_s0, 128, %s1849_s18, [#allocation8]   ;;  %v938_v39 = vld [vmem:[%s1845_s14] ss:$0 sm:$0xff] }
 0x2f6   :  { %s1351_s17 = smov [#allocation2]  }
 0x2f7   :  { %s887_s5 = sshll.u32 %s1351_s17, 4  ;;  %s888_s5 = int_to_ptr.vmem [resolvable:$true] %s887_s5 }
 0x2f8   :  { %s1320_s1 = scalar_lea.vmem %s888_s5, 128  ;;  %p1325_p2 = scmp.lt.s32.totalorder %s888_s5, %s888_s5 }
 0x2f9   :  { %p1321_p1 = scmp.ne.s32.totalorder %s888_s5, %s1320_s1  ;;  %p1326_p3 = scmp.lt.s32.totalorder %s1320_s1, %s1320_s1 }
 0x2fb   :  { %p1327_p4 = por %p1326_p3, %p1325_p2 }
 0x2fd   :  { %p1328_p5 = pnand %p1327_p4, %p1321_p1 }
 0x39d   :  { %v1163_v55 = vpop.f32.mrf.mxu1 }
 0x39f   :  { %v1164_v20 = vpop.f32.mrf.mxu1 }
 0x3a0   :  { %v1165_v21 = vadd.f32 %v1164_v20, %v1163_v55 }
 0x3a2   :  { %v868_v22 = vadd.f32 %v1165_v21, %v938_v39 }
 0x3a4   :  { %v939_v23 = vmul.f32 -1.442695, %v868_v22 }
 0x3a6   :  { %1256 = vpow2.f32 %v939_v23 }
 0x3b3   :  { %v1257_v24 = vpop.eup %1256 }
 0x3b4   :  { %v874_v25 = vadd.f32 1.0, %v1257_v24 }
 0x3b6   :  { %1258 = vrcp.f32 %v874_v25 }
 0x3c3   :  { %v1259_v26 = vpop.eup %1258 }
 0x3c4   :  { %877 = vst [vmem:[#allocation2] sm:$0xff] %v1259_v26 }
 0x3c5   :  { %1331 = shalt.err (!%p1328_p5)
}
 0x3c6   :  { %890 = dma.vmem_to_hbm [thread:$0]  %s888_s5, 128, %s1846_s15, [#allocation3]  }
 0x3c7   :  { %1340 = dma.done.wait [#allocation3], 128  }
 0x3c8   :  { %1341 = vsyncadd [#allocation3], 4294967168 }
 0x3c9   :  { %1342 = dma.done.wait [#allocation5], 256  }
 0x3ca   :  { %1343 = vsyncadd [#allocation5], 4294967040 }
 0x3cb   :  { %1344 = dma.done.wait [#allocation8], 128  }
 0x3cc   :  { %1345 = vsyncadd [#allocation8], 4294967168 }
 0x3cd   :  { %933 = vsyncpa [#allocation3], 1 }
 0x3ce   :  { %934 = vsyncpa [#allocation5], 1 }
 0x3cf   :  { %935 = vsyncpa [#allocation8], 1 }

</bundles_post_ra>
